<compile_context>
chip_gen: v7x
topology: tpu7x:2x2x1
jax: 0.10.0
libtpu: 0.0.40
codegen_flags: <defaults>
</compile_context>

<pallas_src>
import functools

import jax
import jax.numpy as jnp
from jax import lax
from jax.experimental import pallas as pl
from jax.experimental.pallas import tpu as pltpu

_LANE = 128
_SUB = 8
_N_MOM = 11  # sum(t), sum(t^2), and (sum(s), sum(s^2), sum(t*s)) for each of s1, s2, s3


def _moments_kernel(s1_ref, s2_ref, s3_ref, tgt_ref, mom_ref, *,
                    rows, tile_rows, half_tiles, has_tail):
    c = pl.program_id(0)          # split / core index ("parallel")
    k = pl.program_id(1)          # tile index within the split ("arbitrary")
    g = c * half_tiles + k        # global (unclamped) tile index
    bsz = tgt_ref.shape[0]
    n_chunks = tile_rows // _SUB

    @pl.when(k == 0)
    def _init():
        mom_ref[...] = jnp.zeros_like(mom_ref)

    def accumulate(masked):
        # Fused single pass: each (B, 8, 128) vreg group of t / s1 / s2 / s3 is loaded once and
        # feeds all five raw-moment accumulators carried in registers across the fori_loop.
        def body(i, accs):
            sl = pl.ds(pl.multiple_of(i * _SUB, _SUB), _SUB)
            t = tgt_ref[:, sl, :].astype(jnp.float32)
            x1 = s1_ref[:, sl, :].astype(jnp.float32)
            x2 = s2_ref[:, sl, :].astype(jnp.float32)
            x3 = s3_ref[:, sl, :].astype(jnp.float32)
            if masked:
                base = g * tile_rows + i * _SUB
                row_id = lax.broadcasted_iota(jnp.int32, (1, _SUB, _LANE), 1) + base
                valid = row_id < rows
                zero = jnp.float32(0.0)
                t = jnp.where(valid, t, zero)
                x1 = jnp.where(valid, x1, zero)
                x2 = jnp.where(valid, x2, zero)
                x3 = jnp.where(valid, x3, zero)
            return (accs[0] + t, accs[1] + t * t,
                    accs[2] + x1, accs[3] + x1 * x1, accs[4] + t * x1,
                    accs[5] + x2, accs[6] + x2 * x2, accs[7] + t * x2,
                    accs[8] + x3, accs[9] + x3 * x3, accs[10] + t * x3)

        init = tuple(jnp.zeros((bsz, _SUB, _LANE), jnp.float32) for _ in range(_N_MOM))
        unroll = 2 if (n_chunks % 2 == 0 and n_chunks >= 2) else 1
        accs = lax.fori_loop(0, n_chunks, body, init, unroll=unroll)
        for idx in range(_N_MOM):
            mom_ref[idx] += accs[idx]

    if has_tail:
        fits = (g + 1) * tile_rows <= rows

        @pl.when(fits)
        def _fast():
            accumulate(masked=False)

        @pl.when(jnp.logical_not(fits))
        def _tail():
            accumulate(masked=True)
    else:
        accumulate(masked=False)


def _finalize_kernel(sid_ref, mom_ref, pred_ref, out_ref, *, alpha, beta, gamma, n_time):
    eps = jnp.float32(1e-6)
    inv_T = jnp.float32(1.0 / n_time)

    mom = mom_ref[...]                                   # (n_split*11, B, 8, 128) f32
    n_parts = mom.shape[0] // _N_MOM
    m = mom[0:_N_MOM]
    for s in range(1, n_parts):                          # combine per-core partial moments
        m = m + mom[s * _N_MOM:(s + 1) * _N_MOM]
    m = jnp.sum(m, axis=2)                               # (11, B, 128) sublane reduce
    r = jnp.sum(m, axis=-1)                              # (11, B)      lane reduce

    sum_t = r[0:1, :]
    sum_tt = r[1:2, :]
    # centered ||target||^2 folded over the batch (matches reference: whole-tensor norm)
    tt_c = jnp.sum(sum_tt - sum_t * sum_t * inv_T)

    def si_sdr_term(base):
        sum_s = r[base:base + 1, :]
        sum_ss = r[base + 1:base + 2, :]
        sum_ts = r[base + 2:base + 3, :]
        dot_c = jnp.sum(sum_ts - sum_t * sum_s * inv_T)      # <t_c, s_c>
        ss_c = jnp.sum(sum_ss - sum_s * sum_s * inv_T)       # ||s_c||^2
        a = dot_c / tt_c
        at_sq = a * a * tt_c                                  # ||a * t_c||^2
        num = jnp.sqrt(jnp.maximum(at_sq, jnp.float32(0.0)))
        den = jnp.sqrt(jnp.maximum(at_sq - 2.0 * a * dot_c + ss_c, jnp.float32(0.0)))
        return jnp.float32(20.0) * jnp.log10(num / (den + eps) + eps)

    si1 = si_sdr_term(2)
    si2 = si_sdr_term(5)
    si3 = si_sdr_term(8)

    bsz, n_cls = pred_ref.shape
    inv_B = jnp.float32(1.0 / bsz)
    w1 = jnp.float32(1.0 - alpha - beta)
    loss_si = -(w1 * si1 + jnp.float32(alpha) * si2 + jnp.float32(beta) * si3) * inv_B

    # ---- cross entropy over speaker logits (mean reduction) ----
    logits = pred_ref[...].astype(jnp.float32)            # (B, C)
    mx = jnp.max(logits, axis=-1, keepdims=True)
    lse = mx + jnp.log(jnp.sum(jnp.exp(logits - mx), axis=-1, keepdims=True))
    lane_ids = lax.broadcasted_iota(jnp.int32, (1, n_cls), 1)
    picked = jnp.float32(0.0)
    for b in range(bsz):                                   # B is small & static
        lbl = sid_ref[b]
        picked += jnp.sum(jnp.where(lane_ids == lbl, logits[b:b + 1, :], jnp.float32(0.0)))
    ce = (jnp.sum(lse) - picked) * inv_B

    out_ref[0, 0] = loss_si + jnp.float32(gamma) * ce


def spex_plus_loss(s1, s2, s3, speaker_pred, target_wav, speaker_id,
                   *, alpha, beta, gamma, block_target_bytes=4 << 20):
    """Pallas TPU implementation of SpExPlusLoss.forward (returns a scalar)."""
    B, T = target_wav.shape
    _, C = speaker_pred.shape

    # ---- lane-dense layout (B, rows, 128): pad only to the next multiple of 128 ----
    T_pad = ((T + _LANE - 1) // _LANE) * _LANE
    rows = T_pad // _LANE

    def prep(x):
        if T_pad != T:
            x = jnp.pad(x, ((0, 0), (0, T_pad - T)))   # zero pad: exact under moment algebra
        return x.reshape(B, rows, _LANE)               # row-major reshape: free

    s1r, s2r, s3r, tgtr = prep(s1), prep(s2), prep(s3), prep(target_wav)
    sid = speaker_id.astype(jnp.int32).reshape(B)

    # ---- tile sizing: ~4 MiB per input block, explicit VMEM limit ----
    itemsize = max(jnp.dtype(x.dtype).itemsize for x in (s1, s2, s3, target_wav))
    budget_rows = max(_SUB, ((block_target_bytes // (B * _LANE * itemsize)) // _SUB) * _SUB)
    rows8 = ((rows + _SUB - 1) // _SUB) * _SUB
    tile_rows = min(budget_rows, rows8)
    num_tiles = pl.cdiv(rows, tile_rows)

    # Split the time axis across both TensorCores on v7x; single-core parts just iterate.
    n_split = 2 if num_tiles >= 2 else 1
    half_tiles = pl.cdiv(num_tiles, n_split)
    has_tail = (n_split * half_tiles * tile_rows) != rows

    block_bytes = B * tile_rows * _LANE * itemsize
    vmem_limit = int(min(max(4 * 2 * block_bytes + (4 << 20), 32 << 20), 60 << 20))

    def wav_map(c, k):
        # Clamp so duplicated tiles (odd split) never index past the array; the kernel masks them.
        return (0, jnp.minimum(c * half_tiles + k, num_tiles - 1), 0)

    wav_spec = pl.BlockSpec((B, tile_rows, _LANE), wav_map)

    mom_kernel = functools.partial(_moments_kernel, rows=rows, tile_rows=tile_rows,
                                   half_tiles=half_tiles, has_tail=has_tail)

    moments = pl.pallas_call(
        mom_kernel,
        out_shape=jax.ShapeDtypeStruct((n_split * _N_MOM, B, _SUB, _LANE), jnp.float32),
        grid_spec=pltpu.PrefetchScalarGridSpec(
            num_scalar_prefetch=0,
            grid=(n_split, half_tiles),
            in_specs=[wav_spec, wav_spec, wav_spec, wav_spec],
            out_specs=pl.BlockSpec((_N_MOM, B, _SUB, _LANE), lambda c, k: (c, 0, 0, 0)),
        ),
        compiler_params=pltpu.CompilerParams(
            dimension_semantics=("parallel", "arbitrary"),
            vmem_limit_bytes=vmem_limit,
        ),
    )(s1r, s2r, s3r, tgtr)

    fin_kernel = functools.partial(_finalize_kernel, alpha=alpha, beta=beta,
                                   gamma=gamma, n_time=T)

    out = pl.pallas_call(
        fin_kernel,
        out_shape=jax.ShapeDtypeStruct((1, 1), jnp.float32),
        grid_spec=pltpu.PrefetchScalarGridSpec(
            num_scalar_prefetch=1,
            grid=(1,),
            in_specs=[
                pl.BlockSpec((n_split * _N_MOM, B, _SUB, _LANE),
                             lambda i, sid_ref: (0, 0, 0, 0)),
                pl.BlockSpec((B, C), lambda i, sid_ref: (0, 0)),
            ],
            out_specs=pl.BlockSpec((1, 1), lambda i, sid_ref: (0, 0)),
        ),
        compiler_params=pltpu.CompilerParams(dimension_semantics=("arbitrary",)),
    )(sid, moments, speaker_pred)
    return out[0, 0]


def _reference(s1, s2, s3, speaker_pred, target_wav, speaker_id, *, alpha, beta, gamma):
    """Pure-JAX reference mirroring the PyTorch module, for a sanity check."""
    eps = 1e-6

    def center(x):
        return x - x.mean(axis=-1, keepdims=True)

    s1, s2, s3, t = center(s1), center(s2), center(s3), center(target_wav)

    def si_sdr(est, tgt):
        a = jnp.sum(tgt * est) / (jnp.linalg.norm(tgt) ** 2)
        return 20.0 * jnp.log10(
            jnp.linalg.norm(a * tgt) / (jnp.linalg.norm(a * tgt - est) + eps) + eps)

    B = t.shape[0]
    loss_si = (-(1 - alpha - beta) * si_sdr(s1, t)
               - alpha * si_sdr(s2, t)
               - beta * si_sdr(s3, t)) / B
    logp = jax.nn.log_softmax(speaker_pred, axis=-1)
    ce = -jnp.mean(logp[jnp.arange(B), speaker_id])
    return loss_si + gamma * ce


if __name__ == "__main__":
    alpha, beta, gamma = 0.1, 0.1, 0.5           # deterministic loss hyper-parameters
    ks = jax.random.split(jax.random.PRNGKey(0), 12)

    # ---- test 1: small shapes, single-tile path ----
    B, T, C = 2, 1000, 16
    s1 = jax.random.normal(ks[0], (B, T), jnp.float32)
    s2 = jax.random.normal(ks[1], (B, T), jnp.float32)
    s3 = jax.random.normal(ks[2], (B, T), jnp.float32)
    target_wav = jax.random.normal(ks[3], (B, T), jnp.float32)
    speaker_pred = jax.random.normal(ks[4], (B, C), jnp.float32)
    speaker_id = jax.random.randint(ks[5], (B,), 0, C, jnp.int32)

    loss = spex_plus_loss(s1, s2, s3, speaker_pred, target_wav, speaker_id,
                          alpha=alpha, beta=beta, gamma=gamma)
    loss = jax.block_until_ready(loss)
    ref = _reference(s1, s2, s3, speaker_pred, target_wav, speaker_id,
                     alpha=alpha, beta=beta, gamma=gamma)
    assert jnp.allclose(loss, ref, rtol=1e-4, atol=1e-4), (loss, ref)

    # ---- test 2: multi-tile + dual-core split + ragged-tail masking (small forced tiles) ----
    B2, T2, C2 = 3, 50000, 16
    s1b = jax.random.normal(ks[6], (B2, T2), jnp.float32)
    s2b = jax.random.normal(ks[7], (B2, T2), jnp.float32)
    s3b = jax.random.normal(ks[8], (B2, T2), jnp.float32)
    tgtb = jax.random.normal(ks[9], (B2, T2), jnp.float32)
    predb = jax.random.normal(ks[10], (B2, C2), jnp.float32)
    sidb = jax.random.randint(ks[11], (B2,), 0, C2, jnp.int32)

    loss2 = spex_plus_loss(s1b, s2b, s3b, predb, tgtb, sidb,
                           alpha=alpha, beta=beta, gamma=gamma,
                           block_target_bytes=64 << 10)
    loss2 = jax.block_until_ready(loss2)
    ref2 = _reference(s1b, s2b, s3b, predb, tgtb, sidb,
                      alpha=alpha, beta=beta, gamma=gamma)
    assert jnp.allclose(loss2, ref2, rtol=1e-3, atol=1e-3), (loss2, ref2)

    print("KERNEL_OK")
</pallas_src>

<mosaic_0001>
module attributes {stable_mosaic.version = 11 : i64} {
  func.func @_moments_kernel(%arg0: i32, %arg1: i32, %arg2: memref<2x8x128xf32, #tpu.memory_space<vmem>>, %arg3: memref<2x8x128xf32, #tpu.memory_space<vmem>>, %arg4: memref<2x8x128xf32, #tpu.memory_space<vmem>>, %arg5: memref<2x8x128xf32, #tpu.memory_space<vmem>>, %arg6: memref<11x2x8x128xf32, #tpu.memory_space<vmem>>) attributes {dimension_semantics = [#tpu.dimension_semantics<parallel>, #tpu.dimension_semantics<arbitrary>], iteration_bounds = array<i64: 1, 1>, scalar_prefetch = 0 : i64, scratch_operands = 0 : i64, tpu.core_type = #tpu.core_type<tc>, window_params = [{transform_indices = @transform_0, window_bounds = array<i64: 2, 8, 128>}, {transform_indices = @transform_1, window_bounds = array<i64: 2, 8, 128>}, {transform_indices = @transform_2, window_bounds = array<i64: 2, 8, 128>}, {transform_indices = @transform_3, window_bounds = array<i64: 2, 8, 128>}, {transform_indices = @transform_4, window_bounds = array<i64: 11, 2, 8, 128>}]} {
    %c0_i32 = arith.constant 0 : i32
    %0 = arith.cmpi eq, %arg1, %c0_i32 : i32
    %1 = arith.extui %0 : i1 to i32
    %c0_i32_0 = arith.constant 0 : i32
    %2 = arith.cmpi ne, %1, %c0_i32_0 : i32
    scf.if %2 {
      %cst_97 = arith.constant 0.000000e+00 : f32
      %108 = vector.broadcast %cst_97 : f32 to vector<11x2x8x128xf32>
      %c0_98 = arith.constant 0 : index
      %c0_99 = arith.constant 0 : index
      %c0_100 = arith.constant 0 : index
      %c0_101 = arith.constant 0 : index
      %109 = vector.load %arg6[%c0_98, %c0_99, %c0_100, %c0_101] : memref<11x2x8x128xf32, #tpu.memory_space<vmem>>, vector<11x2x8x128xf32>
      tpu.vector_store %arg6[%c0_98, %c0_99, %c0_100, %c0_101], %108 {strides = array<i32>} : memref<11x2x8x128xf32, #tpu.memory_space<vmem>>, vector<11x2x8x128xf32>,
    } else {
    }
    %cst = arith.constant 0.000000e+00 : f32
    %3 = vector.broadcast %cst : f32 to vector<2x8x128xf32>
    %cst_1 = arith.constant 0.000000e+00 : f32
    %4 = vector.broadcast %cst_1 : f32 to vector<2x8x128xf32>
    %cst_2 = arith.constant 0.000000e+00 : f32
    %5 = vector.broadcast %cst_2 : f32 to vector<2x8x128xf32>
    %cst_3 = arith.constant 0.000000e+00 : f32
    %6 = vector.broadcast %cst_3 : f32 to vector<2x8x128xf32>
    %cst_4 = arith.constant 0.000000e+00 : f32
    %7 = vector.broadcast %cst_4 : f32 to vector<2x8x128xf32>
    %cst_5 = arith.constant 0.000000e+00 : f32
    %8 = vector.broadcast %cst_5 : f32 to vector<2x8x128xf32>
    %cst_6 = arith.constant 0.000000e+00 : f32
    %9 = vector.broadcast %cst_6 : f32 to vector<2x8x128xf32>
    %cst_7 = arith.constant 0.000000e+00 : f32
    %10 = vector.broadcast %cst_7 : f32 to vector<2x8x128xf32>
    %cst_8 = arith.constant 0.000000e+00 : f32
    %11 = vector.broadcast %cst_8 : f32 to vector<2x8x128xf32>
    %cst_9 = arith.constant 0.000000e+00 : f32
    %12 = vector.broadcast %cst_9 : f32 to vector<2x8x128xf32>
    %cst_10 = arith.constant 0.000000e+00 : f32
    %13 = vector.broadcast %cst_10 : f32 to vector<2x8x128xf32>
    %c0_i32_11 = arith.constant 0 : i32
    %c8_i32 = arith.constant 8 : i32
    %14 = arith.muli %c0_i32_11, %c8_i32 : i32
    %15 = tpu.assume_multiple %14, 8 : i32
    %c0 = arith.constant 0 : index
    %16 = arith.index_cast %15 : i32 to index
    %c0_12 = arith.constant 0 : index
    %17 = vector.load %arg5[%c0, %16, %c0_12] : memref<2x8x128xf32, #tpu.memory_space<vmem>>, vector<2x8x128xf32>
    %c0_13 = arith.constant 0 : index
    %18 = arith.index_cast %15 : i32 to index
    %c0_14 = arith.constant 0 : index
    %19 = vector.load %arg2[%c0_13, %18, %c0_14] : memref<2x8x128xf32, #tpu.memory_space<vmem>>, vector<2x8x128xf32>
    %c0_15 = arith.constant 0 : index
    %20 = arith.index_cast %15 : i32 to index
    %c0_16 = arith.constant 0 : index
    %21 = vector.load %arg3[%c0_15, %20, %c0_16] : memref<2x8x128xf32, #tpu.memory_space<vmem>>, vector<2x8x128xf32>
    %c0_17 = arith.constant 0 : index
    %22 = arith.index_cast %15 : i32 to index
    %c0_18 = arith.constant 0 : index
    %23 = vector.load %arg4[%c0_17, %22, %c0_18] : memref<2x8x128xf32, #tpu.memory_space<vmem>>, vector<2x8x128xf32>
    %24 = arith.addf %3, %17 : vector<2x8x128xf32>
    %25 = arith.mulf %17, %17 : vector<2x8x128xf32>
    %26 = arith.addf %4, %25 : vector<2x8x128xf32>
    %27 = arith.addf %5, %19 : vector<2x8x128xf32>
    %28 = arith.mulf %19, %19 : vector<2x8x128xf32>
    %29 = arith.addf %6, %28 : vector<2x8x128xf32>
    %30 = arith.mulf %17, %19 : vector<2x8x128xf32>
    %31 = arith.addf %7, %30 : vector<2x8x128xf32>
    %32 = arith.addf %8, %21 : vector<2x8x128xf32>
    %33 = arith.mulf %21, %21 : vector<2x8x128xf32>
    %34 = arith.addf %9, %33 : vector<2x8x128xf32>
    %35 = arith.mulf %17, %21 : vector<2x8x128xf32>
    %36 = arith.addf %10, %35 : vector<2x8x128xf32>
    %37 = arith.addf %11, %23 : vector<2x8x128xf32>
    %38 = arith.mulf %23, %23 : vector<2x8x128xf32>
    %39 = arith.addf %12, %38 : vector<2x8x128xf32>
    %40 = arith.mulf %17, %23 : vector<2x8x128xf32>
    %41 = arith.addf %13, %40 : vector<2x8x128xf32>
    %c1_i32 = arith.constant 1 : i32
    %c0_19 = arith.constant 0 : index
    %c0_20 = arith.constant 0 : index
    %c0_21 = arith.constant 0 : index
    %c0_22 = arith.constant 0 : index
    %42 = vector.load %arg6[%c0_19, %c0_20, %c0_21, %c0_22] : memref<11x2x8x128xf32, #tpu.memory_space<vmem>>, vector<1x2x8x128xf32>
    %43 = vector.shape_cast %42 : vector<1x2x8x128xf32> to vector<2x8x128xf32>
    %44 = arith.addf %43, %24 : vector<2x8x128xf32>
    %c0_23 = arith.constant 0 : index
    %c0_24 = arith.constant 0 : index
    %c0_25 = arith.constant 0 : index
    %c0_26 = arith.constant 0 : index
    %45 = vector.load %arg6[%c0_23, %c0_24, %c0_25, %c0_26] : memref<11x2x8x128xf32, #tpu.memory_space<vmem>>, vector<1x2x8x128xf32>
    %46 = vector.shape_cast %45 : vector<1x2x8x128xf32> to vector<2x8x128xf32>
    %47 = vector.shape_cast %44 : vector<2x8x128xf32> to vector<1x2x8x128xf32>
    tpu.vector_store %arg6[%c0_23, %c0_24, %c0_25, %c0_26], %47 {strides = array<i32>} : memref<11x2x8x128xf32, #tpu.memory_space<vmem>>, vector<1x2x8x128xf32>,
    %c1 = arith.constant 1 : index
    %c0_27 = arith.constant 0 : index
    %c0_28 = arith.constant 0 : index
    %c0_29 = arith.constant 0 : index
    %48 = vector.load %arg6[%c1, %c0_27, %c0_28, %c0_29] : memref<11x2x8x128xf32, #tpu.memory_space<vmem>>, vector<1x2x8x128xf32>
    %49 = vector.shape_cast %48 : vector<1x2x8x128xf32> to vector<2x8x128xf32>
    %50 = arith.addf %49, %26 : vector<2x8x128xf32>
    %c1_30 = arith.constant 1 : index
    %c0_31 = arith.constant 0 : index
    %c0_32 = arith.constant 0 : index
    %c0_33 = arith.constant 0 : index
    %51 = vector.load %arg6[%c1_30, %c0_31, %c0_32, %c0_33] : memref<11x2x8x128xf32, #tpu.memory_space<vmem>>, vector<1x2x8x128xf32>
    %52 = vector.shape_cast %51 : vector<1x2x8x128xf32> to vector<2x8x128xf32>
    %53 = vector.shape_cast %50 : vector<2x8x128xf32> to vector<1x2x8x128xf32>
    tpu.vector_store %arg6[%c1_30, %c0_31, %c0_32, %c0_33], %53 {strides = array<i32>} : memref<11x2x8x128xf32, #tpu.memory_space<vmem>>, vector<1x2x8x128xf32>,
    %c2 = arith.constant 2 : index
    %c0_34 = arith.constant 0 : index
    %c0_35 = arith.constant 0 : index
    %c0_36 = arith.constant 0 : index
    %54 = vector.load %arg6[%c2, %c0_34, %c0_35, %c0_36] : memref<11x2x8x128xf32, #tpu.memory_space<vmem>>, vector<1x2x8x128xf32>
    %55 = vector.shape_cast %54 : vector<1x2x8x128xf32> to vector<2x8x128xf32>
    %56 = arith.addf %55, %27 : vector<2x8x128xf32>
    %c2_37 = arith.constant 2 : index
    %c0_38 = arith.constant 0 : index
    %c0_39 = arith.constant 0 : index
    %c0_40 = arith.constant 0 : index
    %57 = vector.load %arg6[%c2_37, %c0_38, %c0_39, %c0_40] : memref<11x2x8x128xf32, #tpu.memory_space<vmem>>, vector<1x2x8x128xf32>
    %58 = vector.shape_cast %57 : vector<1x2x8x128xf32> to vector<2x8x128xf32>
    %59 = vector.shape_cast %56 : vector<2x8x128xf32> to vector<1x2x8x128xf32>
    tpu.vector_store %arg6[%c2_37, %c0_38, %c0_39, %c0_40], %59 {strides = array<i32>} : memref<11x2x8x128xf32, #tpu.memory_space<vmem>>, vector<1x2x8x128xf32>,
    %c3 = arith.constant 3 : index
    %c0_41 = arith.constant 0 : index
    %c0_42 = arith.constant 0 : index
    %c0_43 = arith.constant 0 : index
    %60 = vector.load %arg6[%c3, %c0_41, %c0_42, %c0_43] : memref<11x2x8x128xf32, #tpu.memory_space<vmem>>, vector<1x2x8x128xf32>
    %61 = vector.shape_cast %60 : vector<1x2x8x128xf32> to vector<2x8x128xf32>
    %62 = arith.addf %61, %29 : vector<2x8x128xf32>
    %c3_44 = arith.constant 3 : index
    %c0_45 = arith.constant 0 : index
    %c0_46 = arith.constant 0 : index
    %c0_47 = arith.constant 0 : index
    %63 = vector.load %arg6[%c3_44, %c0_45, %c0_46, %c0_47] : memref<11x2x8x128xf32, #tpu.memory_space<vmem>>, vector<1x2x8x128xf32>
    %64 = vector.shape_cast %63 : vector<1x2x8x128xf32> to vector<2x8x128xf32>
    %65 = vector.shape_cast %62 : vector<2x8x128xf32> to vector<1x2x8x128xf32>
    tpu.vector_store %arg6[%c3_44, %c0_45, %c0_46, %c0_47], %65 {strides = array<i32>} : memref<11x2x8x128xf32, #tpu.memory_space<vmem>>, vector<1x2x8x128xf32>,
    %c4 = arith.constant 4 : index
    %c0_48 = arith.constant 0 : index
    %c0_49 = arith.constant 0 : index
    %c0_50 = arith.constant 0 : index
    %66 = vector.load %arg6[%c4, %c0_48, %c0_49, %c0_50] : memref<11x2x8x128xf32, #tpu.memory_space<vmem>>, vector<1x2x8x128xf32>
    %67 = vector.shape_cast %66 : vector<1x2x8x128xf32> to vector<2x8x128xf32>
    %68 = arith.addf %67, %31 : vector<2x8x128xf32>
    %c4_51 = arith.constant 4 : index
    %c0_52 = arith.constant 0 : index
    %c0_53 = arith.constant 0 : index
    %c0_54 = arith.constant 0 : index
    %69 = vector.load %arg6[%c4_51, %c0_52, %c0_53, %c0_54] : memref<11x2x8x128xf32, #tpu.memory_space<vmem>>, vector<1x2x8x128xf32>
    %70 = vector.shape_cast %69 : vector<1x2x8x128xf32> to vector<2x8x128xf32>
    %71 = vector.shape_cast %68 : vector<2x8x128xf32> to vector<1x2x8x128xf32>
    tpu.vector_store %arg6[%c4_51, %c0_52, %c0_53, %c0_54], %71 {strides = array<i32>} : memref<11x2x8x128xf32, #tpu.memory_space<vmem>>, vector<1x2x8x128xf32>,
    %c5 = arith.constant 5 : index
    %c0_55 = arith.constant 0 : index
    %c0_56 = arith.constant 0 : index
    %c0_57 = arith.constant 0 : index
    %72 = vector.load %arg6[%c5, %c0_55, %c0_56, %c0_57] : memref<11x2x8x128xf32, #tpu.memory_space<vmem>>, vector<1x2x8x128xf32>
    %73 = vector.shape_cast %72 : vector<1x2x8x128xf32> to vector<2x8x128xf32>
    %74 = arith.addf %73, %32 : vector<2x8x128xf32>
    %c5_58 = arith.constant 5 : index
    %c0_59 = arith.constant 0 : index
    %c0_60 = arith.constant 0 : index
    %c0_61 = arith.constant 0 : index
    %75 = vector.load %arg6[%c5_58, %c0_59, %c0_60, %c0_61] : memref<11x2x8x128xf32, #tpu.memory_space<vmem>>, vector<1x2x8x128xf32>
    %76 = vector.shape_cast %75 : vector<1x2x8x128xf32> to vector<2x8x128xf32>
    %77 = vector.shape_cast %74 : vector<2x8x128xf32> to vector<1x2x8x128xf32>
    tpu.vector_store %arg6[%c5_58, %c0_59, %c0_60, %c0_61], %77 {strides = array<i32>} : memref<11x2x8x128xf32, #tpu.memory_space<vmem>>, vector<1x2x8x128xf32>,
    %c6 = arith.constant 6 : index
    %c0_62 = arith.constant 0 : index
    %c0_63 = arith.constant 0 : index
    %c0_64 = arith.constant 0 : index
    %78 = vector.load %arg6[%c6, %c0_62, %c0_63, %c0_64] : memref<11x2x8x128xf32, #tpu.memory_space<vmem>>, vector<1x2x8x128xf32>
    %79 = vector.shape_cast %78 : vector<1x2x8x128xf32> to vector<2x8x128xf32>
    %80 = arith.addf %79, %34 : vector<2x8x128xf32>
    %c6_65 = arith.constant 6 : index
    %c0_66 = arith.constant 0 : index
    %c0_67 = arith.constant 0 : index
    %c0_68 = arith.constant 0 : index
    %81 = vector.load %arg6[%c6_65, %c0_66, %c0_67, %c0_68] : memref<11x2x8x128xf32, #tpu.memory_space<vmem>>, vector<1x2x8x128xf32>
    %82 = vector.shape_cast %81 : vector<1x2x8x128xf32> to vector<2x8x128xf32>
    %83 = vector.shape_cast %80 : vector<2x8x128xf32> to vector<1x2x8x128xf32>
    tpu.vector_store %arg6[%c6_65, %c0_66, %c0_67, %c0_68], %83 {strides = array<i32>} : memref<11x2x8x128xf32, #tpu.memory_space<vmem>>, vector<1x2x8x128xf32>,
    %c7 = arith.constant 7 : index
    %c0_69 = arith.constant 0 : index
    %c0_70 = arith.constant 0 : index
    %c0_71 = arith.constant 0 : index
    %84 = vector.load %arg6[%c7, %c0_69, %c0_70, %c0_71] : memref<11x2x8x128xf32, #tpu.memory_space<vmem>>, vector<1x2x8x128xf32>
    %85 = vector.shape_cast %84 : vector<1x2x8x128xf32> to vector<2x8x128xf32>
    %86 = arith.addf %85, %36 : vector<2x8x128xf32>
    %c7_72 = arith.constant 7 : index
    %c0_73 = arith.constant 0 : index
    %c0_74 = arith.constant 0 : index
    %c0_75 = arith.constant 0 : index
    %87 = vector.load %arg6[%c7_72, %c0_73, %c0_74, %c0_75] : memref<11x2x8x128xf32, #tpu.memory_space<vmem>>, vector<1x2x8x128xf32>
    %88 = vector.shape_cast %87 : vector<1x2x8x128xf32> to vector<2x8x128xf32>
    %89 = vector.shape_cast %86 : vector<2x8x128xf32> to vector<1x2x8x128xf32>
    tpu.vector_store %arg6[%c7_72, %c0_73, %c0_74, %c0_75], %89 {strides = array<i32>} : memref<11x2x8x128xf32, #tpu.memory_space<vmem>>, vector<1x2x8x128xf32>,
    %c8 = arith.constant 8 : index
    %c0_76 = arith.constant 0 : index
    %c0_77 = arith.constant 0 : index
    %c0_78 = arith.constant 0 : index
    %90 = vector.load %arg6[%c8, %c0_76, %c0_77, %c0_78] : memref<11x2x8x128xf32, #tpu.memory_space<vmem>>, vector<1x2x8x128xf32>
    %91 = vector.shape_cast %90 : vector<1x2x8x128xf32> to vector<2x8x128xf32>
    %92 = arith.addf %91, %37 : vector<2x8x128xf32>
    %c8_79 = arith.constant 8 : index
    %c0_80 = arith.constant 0 : index
    %c0_81 = arith.constant 0 : index
    %c0_82 = arith.constant 0 : index
    %93 = vector.load %arg6[%c8_79, %c0_80, %c0_81, %c0_82] : memref<11x2x8x128xf32, #tpu.memory_space<vmem>>, vector<1x2x8x128xf32>
    %94 = vector.shape_cast %93 : vector<1x2x8x128xf32> to vector<2x8x128xf32>
    %95 = vector.shape_cast %92 : vector<2x8x128xf32> to vector<1x2x8x128xf32>
    tpu.vector_store %arg6[%c8_79, %c0_80, %c0_81, %c0_82], %95 {strides = array<i32>} : memref<11x2x8x128xf32, #tpu.memory_space<vmem>>, vector<1x2x8x128xf32>,
    %c9 = arith.constant 9 : index
    %c0_83 = arith.constant 0 : index
    %c0_84 = arith.constant 0 : index
    %c0_85 = arith.constant 0 : index
    %96 = vector.load %arg6[%c9, %c0_83, %c0_84, %c0_85] : memref<11x2x8x128xf32, #tpu.memory_space<vmem>>, vector<1x2x8x128xf32>
    %97 = vector.shape_cast %96 : vector<1x2x8x128xf32> to vector<2x8x128xf32>
    %98 = arith.addf %97, %39 : vector<2x8x128xf32>
    %c9_86 = arith.constant 9 : index
    %c0_87 = arith.constant 0 : index
    %c0_88 = arith.constant 0 : index
    %c0_89 = arith.constant 0 : index
    %99 = vector.load %arg6[%c9_86, %c0_87, %c0_88, %c0_89] : memref<11x2x8x128xf32, #tpu.memory_space<vmem>>, vector<1x2x8x128xf32>
    %100 = vector.shape_cast %99 : vector<1x2x8x128xf32> to vector<2x8x128xf32>
    %101 = vector.shape_cast %98 : vector<2x8x128xf32> to vector<1x2x8x128xf32>
    tpu.vector_store %arg6[%c9_86, %c0_87, %c0_88, %c0_89], %101 {strides = array<i32>} : memref<11x2x8x128xf32, #tpu.memory_space<vmem>>, vector<1x2x8x128xf32>,
    %c10 = arith.constant 10 : index
    %c0_90 = arith.constant 0 : index
    %c0_91 = arith.constant 0 : index
    %c0_92 = arith.constant 0 : index
    %102 = vector.load %arg6[%c10, %c0_90, %c0_91, %c0_92] : memref<11x2x8x128xf32, #tpu.memory_space<vmem>>, vector<1x2x8x128xf32>
    %103 = vector.shape_cast %102 : vector<1x2x8x128xf32> to vector<2x8x128xf32>
    %104 = arith.addf %103, %41 : vector<2x8x128xf32>
    %c10_93 = arith.constant 10 : index
    %c0_94 = arith.constant 0 : index
    %c0_95 = arith.constant 0 : index
    %c0_96 = arith.constant 0 : index
    %105 = vector.load %arg6[%c10_93, %c0_94, %c0_95, %c0_96] : memref<11x2x8x128xf32, #tpu.memory_space<vmem>>, vector<1x2x8x128xf32>
    %106 = vector.shape_cast %105 : vector<1x2x8x128xf32> to vector<2x8x128xf32>
    %107 = vector.shape_cast %104 : vector<2x8x128xf32> to vector<1x2x8x128xf32>
    tpu.vector_store %arg6[%c10_93, %c0_94, %c0_95, %c0_96], %107 {strides = array<i32>} : memref<11x2x8x128xf32, #tpu.memory_space<vmem>>, vector<1x2x8x128xf32>,
    return
  }
  func.func @transform_0(%arg0: i32, %arg1: i32) -> (i32, i32, i32) {
    %c1_i32 = arith.constant 1 : i32
    %0 = arith.muli %arg0, %c1_i32 : i32
    %1 = arith.addi %0, %arg1 : i32
    %c0_i32 = arith.constant 0 : i32
    %2 = arith.minsi %1, %c0_i32 : i32
    %c0_i32_0 = arith.constant 0 : i32
    %c0_i32_1 = arith.constant 0 : i32
    %c0_i32_2 = arith.constant 0 : i32
    return %c0_i32_0, %2, %c0_i32_1 : i32, i32, i32
  }
  func.func @transform_1(%arg0: i32, %arg1: i32) -> (i32, i32, i32) {
    %c1_i32 = arith.constant 1 : i32
    %0 = arith.muli %arg0, %c1_i32 : i32
    %1 = arith.addi %0, %arg1 : i32
    %c0_i32 = arith.constant 0 : i32
    %2 = arith.minsi %1, %c0_i32 : i32
    %c0_i32_0 = arith.constant 0 : i32
    %c0_i32_1 = arith.constant 0 : i32
    %c0_i32_2 = arith.constant 0 : i32
    return %c0_i32_0, %2, %c0_i32_1 : i32, i32, i32
  }
  func.func @transform_2(%arg0: i32, %arg1: i32) -> (i32, i32, i32) {
    %c1_i32 = arith.constant 1 : i32
    %0 = arith.muli %arg0, %c1_i32 : i32
    %1 = arith.addi %0, %arg1 : i32
    %c0_i32 = arith.constant 0 : i32
    %2 = arith.minsi %1, %c0_i32 : i32
    %c0_i32_0 = arith.constant 0 : i32
    %c0_i32_1 = arith.constant 0 : i32
    %c0_i32_2 = arith.constant 0 : i32
    return %c0_i32_0, %2, %c0_i32_1 : i32, i32, i32
  }
  func.func @transform_3(%arg0: i32, %arg1: i32) -> (i32, i32, i32) {
    %c1_i32 = arith.constant 1 : i32
    %0 = arith.muli %arg0, %c1_i32 : i32
    %1 = arith.addi %0, %arg1 : i32
    %c0_i32 = arith.constant 0 : i32
    %2 = arith.minsi %1, %c0_i32 : i32
    %c0_i32_0 = arith.constant 0 : i32
    %c0_i32_1 = arith.constant 0 : i32
    %c0_i32_2 = arith.constant 0 : i32
    return %c0_i32_0, %2, %c0_i32_1 : i32, i32, i32
  }
  func.func @transform_4(%arg0: i32, %arg1: i32) -> (i32, i32, i32, i32) {
    %c0_i32 = arith.constant 0 : i32
    %c0_i32_0 = arith.constant 0 : i32
    %c0_i32_1 = arith.constant 0 : i32
    %c0_i32_2 = arith.constant 0 : i32
    return %arg0, %c0_i32, %c0_i32_0, %c0_i32_1 : i32, i32, i32, i32
  }
}

</mosaic_0001>

<bundles_post_ra>
// kernel: tpu_custom_call.1
= control target key start
LH: loop header
LB: loop body
LE: loop exit
PB: predicated region body
PF: predicated region fallthrough
CT: control target
= control target key end

     0   :  { %9 = vsyncpa [#allocation3], 0  ;;  %s525_s0 = inlined_call_operand.hbm [shape: f32[2,8,128], index: 0, kind: input, shape index: {}]   ;;  %s526_s1 = inlined_call_operand.hbm [shape: f32[2,8,128], index: 1, kind: input, shape index: {}]   ;;  %s527_s2 = inlined_call_operand.hbm [shape: f32[2,8,128], index: 2, kind: input, shape index: {}]   ;;  %s528_s3 = inlined_call_operand.hbm [shape: f32[2,8,128], index: 3, kind: input, shape index: {}]   ;;  %s529_s4 = inlined_call_operand.hbm [shape: f32[11,2,8,128], index: 4, kind: output, shape index: {}]  }
   0x1   :  { %10 = vsyncpa [#allocation6], 0 }
   0x2   :  { %11 = vsyncpa [#allocation9], 0 }
   0x3   :  { %12 = vsyncpa [#allocation4], 0  ;;  %s404_s15 = smov [#allocation5]   ;;  %s405_s17 = smov [#allocation2]  }
   0x4   :  { %s40_s16 = sshll.u32 %s404_s15, 4  ;;  %s23_s18 = sshll.u32 %s405_s17, 4  ;;  %s41_s16 = int_to_ptr.vmem [resolvable:$true] %s40_s16  ;;  %s436_s18 = int_to_ptr.vmem [resolvable:$true] %s23_s18 }
   0x5   :  { %s286_s21 = scalar_lea.hbm %s526_s1, 256 }
   0x6   :  { %p287_p0 = scmp.ne.s32.totalorder %s526_s1, %s286_s21  ;;  %p290_p1 = scmp.lt.u32.totalorder %s286_s21, %s526_s1 }
   0x8   :  { %p292_p2 = pnand %p290_p1, %p287_p0 }
   0xa   :  { %295 = shalt.err (!%p292_p2)
}
   0xb   :  { %s296_s26 = scalar_lea.vmem %s41_s16, 256  ;;  %p301_p4 = scmp.lt.s32.totalorder %s41_s16, %s41_s16 }
   0xc   :  { %p297_p3 = scmp.ne.s32.totalorder %s41_s16, %s296_s26  ;;  %p302_p5 = scmp.lt.s32.totalorder %s296_s26, %s296_s26 }
   0xe   :  { %p303_p6 = por %p302_p5, %p301_p4 }
  0x10   :  { %p304_p7 = pnand %p303_p6, %p297_p3 }
  0x12   :  { %307 = shalt.err (!%p304_p7)
}
  0x13   :  { %s406_s27 = smov 128   ;;  %s407_s28 = smov 8  }
  0x14   :  { %46 = dma.hbm_to_vmem [thread:$0]  %s526_s1, 256, %s41_s16, [#allocation6], %s406_s27, %s406_s27, %s407_s28  }
  0x15   :  { %s308_s7 = scalar_lea.hbm %s525_s0, 256 }
  0x16   :  { %p309_p8 = scmp.ne.s32.totalorder %s525_s0, %s308_s7  ;;  %p312_p9 = scmp.lt.u32.totalorder %s308_s7, %s525_s0 }
  0x18   :  { %p314_p10 = pnand %p312_p9, %p309_p8 }
  0x1a   :  { %317 = shalt.err (!%p314_p10)
}
  0x1b   :  { %s318_s12 = scalar_lea.vmem %s436_s18, 256  ;;  %p323_p12 = scmp.lt.s32.totalorder %s436_s18, %s436_s18 }
  0x1c   :  { %p319_p11 = scmp.ne.s32.totalorder %s436_s18, %s318_s12  ;;  %p324_p13 = scmp.lt.s32.totalorder %s318_s12, %s318_s12 }
  0x1e   :  { %p325_p0 = por %p324_p13, %p323_p12 }
  0x20   :  { %p326_p1 = pnand %p325_p0, %p319_p11 }
  0x22   :  { %329 = shalt.err (!%p326_p1)
}
  0x23   :  { %29 = dma.hbm_to_vmem [thread:$0]  %s525_s0, 256, %s436_s18, [#allocation3], %s406_s27, %s406_s27, %s407_s28  }
  0x24   :  { %s408_s14 = smov [#allocation7]   ;;  %s409_s16 = smov [#allocation8]  }
  0x25   :  { %s57_s15 = sshll.u32 %s408_s14, 4  ;;  %s74_s17 = sshll.u32 %s409_s16, 4  ;;  %s58_s15 = int_to_ptr.vmem [resolvable:$true] %s57_s15  ;;  %s473_s17 = int_to_ptr.vmem [resolvable:$true] %s74_s17 }
  0x26   :  { %s330_s21 = scalar_lea.hbm %s527_s2, 256 }
  0x27   :  { %p331_p2 = scmp.ne.s32.totalorder %s527_s2, %s330_s21  ;;  %p334_p3 = scmp.lt.u32.totalorder %s330_s21, %s527_s2 }
  0x29   :  { %p336_p4 = pnand %p334_p3, %p331_p2 }
  0x2b   :  { %339 = shalt.err (!%p336_p4)
}
  0x2c   :  { %s340_s0 = scalar_lea.vmem %s58_s15, 256  ;;  %p345_p6 = scmp.lt.s32.totalorder %s58_s15, %s58_s15 }
  0x2d   :  { %p341_p5 = scmp.ne.s32.totalorder %s58_s15, %s340_s0  ;;  %p346_p7 = scmp.lt.s32.totalorder %s340_s0, %s340_s0 }
  0x2f   :  { %p347_p8 = por %p346_p7, %p345_p6 }
  0x31   :  { %p348_p9 = pnand %p347_p8, %p341_p5 }
  0x33   :  { %351 = shalt.err (!%p348_p9)
}
  0x34   :  { %63 = dma.hbm_to_vmem [thread:$0]  %s527_s2, 256, %s58_s15, [#allocation6], %s406_s27, %s406_s27, %s407_s28  }
  0x35   :  { %s352_s5 = scalar_lea.hbm %s528_s3, 256 }
  0x36   :  { %p353_p10 = scmp.ne.s32.totalorder %s528_s3, %s352_s5  ;;  %p356_p11 = scmp.lt.u32.totalorder %s352_s5, %s528_s3 }
  0x38   :  { %p358_p12 = pnand %p356_p11, %p353_p10 }
  0x3a   :  { %361 = shalt.err (!%p358_p12)
}
  0x3b   :  { %s362_s10 = scalar_lea.vmem %s473_s17, 256  ;;  %p367_p0 = scmp.lt.s32.totalorder %s473_s17, %s473_s17 }
  0x3c   :  { %p363_p13 = scmp.ne.s32.totalorder %s473_s17, %s362_s10  ;;  %p368_p1 = scmp.lt.s32.totalorder %s362_s10, %s362_s10 }
  0x3e   :  { %p369_p2 = por %p368_p1, %p367_p0 }
  0x40   :  { %p370_p3 = pnand %p369_p2, %p363_p13 }
  0x42   :  { %373 = shalt.err (!%p370_p3)
}
  0x43   :  { %80 = dma.hbm_to_vmem [thread:$0]  %s528_s3, 256, %s473_s17, [#allocation9], %s406_s27, %s406_s27, %s407_s28  }
  0x44   :  { %396 = dma.done.wait [#allocation3], 256  }
  0x45   :  { %397 = vsyncadd [#allocation3], 4294967040 }
  0x46   :  { %398 = dma.done.wait [#allocation6], 512  }
  0x47   :  { %399 = vsyncadd [#allocation6], 4294966784 }
  0x48   :  { %400 = dma.done.wait [#allocation9], 256  }
  0x49   :  { %401 = vsyncadd [#allocation9], 4294967040  ;;  %v131_v0 = vld [vmem:[#allocation8] sm:$0xff]  ;;  %v132_v1 = vld [vmem:[#allocation8 + $0x8] sm:$0xff]  ;;  %s410_s3 = smov [#allocation10]  }
  0x4a   :  { %v133_v2 = vld [vmem:[#allocation2] sm:$0xff]  ;;  %v141_v3 = vmul.f32 %v131_v0, %v131_v0  ;;  %v142_v4 = vmul.f32 %v132_v1, %v132_v1  ;;  %v134_v5 = vld [vmem:[#allocation2 + $0x8] sm:$0xff]  ;;  %v135_v8 = vld [vmem:[#allocation5] sm:$0xff]  ;;  %179 = vst [vmem:[#allocation10] sm:$0xff] %v131_v0  ;;  %s256_s12 = sshll.u32 %s410_s3, 4  ;;  %s257_s12 = int_to_ptr.vmem [resolvable:$true] %s256_s12 }
  0x4b   :  { %v147_v6 = vmul.f32 %v133_v2, %v133_v2  ;;  %v148_v7 = vmul.f32 %v134_v5, %v134_v5  ;;  %v136_v9 = vld [vmem:[#allocation5 + $0x8] sm:$0xff]  ;;  %180 = vst [vmem:[#allocation10 + $0x8] sm:$0xff] %v132_v1  ;;  %v151_v10 = vmul.f32 %v133_v2, %v131_v0  ;;  %v152_v11 = vmul.f32 %v134_v5, %v132_v1  ;;  %v137_v12 = vld [vmem:[#allocation7] sm:$0xff]  ;;  %v138_v13 = vld [vmem:[#allocation7 + $0x8] sm:$0xff]  ;;  %s374_s1 = scalar_lea.vmem %s257_s12, 2816  ;;  %p379_p5 = scmp.lt.s32.totalorder %s257_s12, %s257_s12 }
  0x4c   :  { %193 = vst [vmem:[#allocation10 + $0x20] sm:$0xff] %v133_v2  ;;  %194 = vst [vmem:[#allocation10 + $0x28] sm:$0xff] %v134_v5  ;;  %v157_v14 = vmul.f32 %v135_v8, %v135_v8  ;;  %v158_v15 = vmul.f32 %v136_v9, %v136_v9  ;;  %v161_v16 = vmul.f32 %v135_v8, %v131_v0  ;;  %p375_p4 = scmp.ne.s32.totalorder %s257_s12, %s374_s1  ;;  %p380_p6 = scmp.lt.s32.totalorder %s374_s1, %s374_s1 }
  0x4d   :  { %186 = vst [vmem:[#allocation10 + $0x10] sm:$0xff] %v141_v3  ;;  %187 = vst [vmem:[#allocation10 + $0x18] sm:$0xff] %v142_v4  ;;  %v162_v17 = vmul.f32 %v136_v9, %v132_v1  ;;  %v167_v18 = vmul.f32 %v137_v12, %v137_v12  ;;  %v168_v19 = vmul.f32 %v138_v13, %v138_v13 }
  0x4e   :  { %200 = vst [vmem:[#allocation10 + $0x30] sm:$0xff] %v147_v6  ;;  %201 = vst [vmem:[#allocation10 + $0x38] sm:$0xff] %v148_v7  ;;  %v171_v20 = vmul.f32 %v137_v12, %v131_v0  ;;  %v172_v21 = vmul.f32 %v138_v13, %v132_v1  ;;  %p381_p7 = por %p380_p6, %p379_p5 }
  0x4f   :  { %214 = vst [vmem:[#allocation10 + $0x50] sm:$0xff] %v135_v8  ;;  %215 = vst [vmem:[#allocation10 + $0x58] sm:$0xff] %v136_v9 }
  0x50   :  { %207 = vst [vmem:[#allocation10 + $0x40] sm:$0xff] %v151_v10  ;;  %208 = vst [vmem:[#allocation10 + $0x48] sm:$0xff] %v152_v11  ;;  %p382_p8 = pnand %p381_p7, %p375_p4 }
  0x51   :  { %235 = vst [vmem:[#allocation10 + $0x80] sm:$0xff] %v137_v12  ;;  %236 = vst [vmem:[#allocation10 + $0x88] sm:$0xff] %v138_v13 }
  0x52   :  { %221 = vst [vmem:[#allocation10 + $0x60] sm:$0xff] %v157_v14  ;;  %222 = vst [vmem:[#allocation10 + $0x68] sm:$0xff] %v158_v15 }
  0x53   :  { %228 = vst [vmem:[#allocation10 + $0x70] sm:$0xff] %v161_v16  ;;  %229 = vst [vmem:[#allocation10 + $0x78] sm:$0xff] %v162_v17 }
  0x54   :  { %242 = vst [vmem:[#allocation10 + $0x90] sm:$0xff] %v167_v18  ;;  %243 = vst [vmem:[#allocation10 + $0x98] sm:$0xff] %v168_v19 }
  0x55   :  { %249 = vst [vmem:[#allocation10 + $0xa0] sm:$0xff] %v171_v20  ;;  %250 = vst [vmem:[#allocation10 + $0xa8] sm:$0xff] %v172_v21 }
  0x56   :  { %385 = shalt.err (!%p382_p8)
}
  0x57   :  { %s386_s15 = scalar_lea.hbm %s529_s4, 2816 }
  0x58   :  { %p387_p9 = scmp.ne.s32.totalorder %s529_s4, %s386_s15  ;;  %p390_p10 = scmp.lt.u32.totalorder %s386_s15, %s529_s4 }
  0x5a   :  { %p392_p11 = pnand %p390_p10, %p387_p9 }
  0x5c   :  { %395 = shalt.err (!%p392_p11)
}
  0x5d   :  { %262 = dma.vmem_to_hbm [thread:$0]  %s257_s12, 2816, %s529_s4, [#allocation4], %s406_s27, %s406_s27, %s407_s28  }
  0x5e   :  { %402 = dma.done.wait [#allocation4], 2816  }
  0x5f   :  { %403 = vsyncadd [#allocation4], 4294964480 }
  0x60   :  { %266 = vsyncpa [#allocation3], 1 }
  0x61   :  { %267 = vsyncpa [#allocation6], 1 }
  0x62   :  { %268 = vsyncpa [#allocation9], 1 }
  0x63   :  { %269 = vsyncpa [#allocation4], 1 }

</bundles_post_ra>
